<compile_context>
chip_gen: v7x
topology: tpu7x:2x2x1
jax: 0.10.0
libtpu: 0.0.40
codegen_flags: <defaults>
</compile_context>

<pallas_src>
import jax
import jax.numpy as jnp
from jax.experimental import pallas as pl
from jax.experimental.pallas import tpu as pltpu


def _gate_kernel(x1p_ref, w_ref, shift_ref, ltq_ref, gate_ref):
    """Per-batch gate: AvgPool(k) -> 1x1 conv (BN folded) -> +shift -> ReLU -> width expand.

    x1p_ref  : (k2, P, Cout, Q)  window-major view of x1 (native dtype)
    w_ref    : (Cin, Cout) f32   1x1 conv weight with the BN scale folded in
    shift_ref: (Cin, 1)    f32   folded conv-bias + BN shift
    ltq_ref  : (Q, Q*Q)    f32   0/1 lane-tile matrix LT[q, j] = (j % Q == q)
    gate_ref : (Cin, P, Q*Q)     output, one width-expanded gate row per p
    """
    k2 = x1p_ref.shape[0]
    P = x1p_ref.shape[1]

    # AvgPool2d(k): sum the k*k window positions (VPU adds) -- no dense pooling matrix.
    acc = x1p_ref[0].astype(jnp.float32)
    for i in range(1, k2):
        acc = acc + x1p_ref[i].astype(jnp.float32)
    pooled = acc * (1.0 / k2)                                           # (P, Cout, Q)

    w = w_ref[...]
    shift = shift_ref[...]
    lt = ltq_ref[...]
    for p in range(P):                                                  # cold, once per batch
        conv = jnp.dot(w, pooled[p], preferred_element_type=jnp.float32)   # (Cin, Q)
        g = jnp.maximum(conv + shift, 0.0)                                  # (Cin, Q)
        # Width expansion (torch repeat along W): row[c, t*Q + q] = g[c, q].
        row = jnp.dot(g, lt, preferred_element_type=jnp.float32)            # (Cin, Q*Q)
        gate_ref[:, p, :] = row.astype(gate_ref.dtype)


def _apply_gate_kernel(gate_ref, x2_ref, out_ref):
    """out = x2 * gate, the (Cb, period) gate broadcast over the m period repetitions."""
    g = gate_ref[...]                                                   # (Cb, P*Q*Q)
    out_ref[...] = (x2_ref[...] * g[:, None, :]).astype(out_ref.dtype)


def _pick_stream_blocks(cin, P, period, x2_itemsize, gate_itemsize,
                        target_bytes=28 * 1024 * 1024):
    """(channel block, periods per block) for the streaming kernel.

    Both block dims obey the BlockSpec (8, 128)/full-dim rule on their second-to-last
    position (c_blk for the gate block, m for the x2/out blocks).  Steady-state VMEM is
    2x input + 2x output double buffers plus 2x the small gate block.
    """
    m_opts = [m for m in range(P, 0, -1) if P % m == 0 and (m % 8 == 0 or m == P)]
    c_opts = [c for c in range(cin, 0, -1) if cin % c == 0 and (c % 8 == 0 or c == cin)]

    def steady_vmem(c, m):
        return 4 * c * m * period * x2_itemsize + 2 * c * period * gate_itemsize

    for c in c_opts:                 # prefer keeping the channel dim whole
        for m in m_opts:             # then the largest row block that fits
            if steady_vmem(c, m) <= target_bytes:
                return c, m
    return c_opts[-1], m_opts[-1]    # smallest legal block; caller checks the budget


def attention_gate_forward(x2, x1, wm, bias, gamma, beta, rmean, rvar, eps,
                           kernel_size, vmem_limit_bytes=40 * 1024 * 1024,
                           target_block_bytes=28 * 1024 * 1024):
    """x2: (B, in_ch, P*P, Q*Q), x1: (B, out_ch, H1, W1), wm: (in_ch, out_ch)."""
    B, Cin, H2, W2x = x2.shape
    B1, Cout, H1, W1 = x1.shape
    assert B == B1
    k = int(kernel_size)
    assert H1 % k == 0 and W1 % k == 0
    P, Q = H1 // k, W1 // k
    # torch semantics: a.repeat(1, P, Q) * x2 requires x2 spatial = (P*P, Q*Q).
    assert H2 == P * P and W2x == Q * Q, "x2 must be (B, in_ch, P*P, Q*Q)"
    QQ = Q * Q
    period = P * QQ                  # gate period length along x2's flattened spatial axis
    k2 = k * k

    f32 = jnp.float32
    # Fold conv bias + eval-mode BatchNorm into the conv weight and a per-channel shift.
    s = (gamma.astype(f32) / jnp.sqrt(rvar.astype(f32) + eps))
    w_s = s[:, None] * wm.astype(f32)                                        # (Cin, Cout)
    shift = (s * (bias.astype(f32) - rmean.astype(f32)) + beta.astype(f32)).reshape(Cin, 1)

    # 0/1 lane-tile matrix: LT[q, j] = 1 iff j % Q == q (torch repeat along width).
    ltq = (jnp.arange(QQ)[None, :] % Q == jnp.arange(Q)[:, None]).astype(f32)

    # Layout plumbing only (x1 is tiny): window-major view so pooling is a k^2-term sum.
    # x1p[b, i*k+j, p, co, q] = x1[b, co, p*k+i, q*k+j]
    x1p = x1.reshape(B, Cout, P, k, Q, k).transpose(0, 3, 5, 2, 1, 4).reshape(B, k2, P, Cout, Q)

    gate_dtype = x2.dtype            # bf16 in -> bf16 gate (v6e/v7x); f32 in -> exact f32 gate

    # --- kernel 1: per-batch gate --------------------------------------------------------
    gate = pl.pallas_call(
        _gate_kernel,
        out_shape=jax.ShapeDtypeStruct((B, Cin, P, QQ), gate_dtype),
        grid=(B,),
        in_specs=[
            pl.BlockSpec((None, k2, P, Cout, Q), lambda b: (b, 0, 0, 0, 0)),
            pl.BlockSpec((Cin, Cout), lambda b: (0, 0)),
            pl.BlockSpec((Cin, 1), lambda b: (0, 0)),
            pl.BlockSpec((Q, QQ), lambda b: (0, 0)),
        ],
        out_specs=pl.BlockSpec((None, Cin, P, QQ), lambda b: (b, 0, 0, 0)),
        compiler_params=pltpu.CompilerParams(
            dimension_semantics=("parallel",),
            vmem_limit_bytes=vmem_limit_bytes,
        ),
    )(x1p, w_s, shift, ltq)
    gate_flat = gate.reshape(B, Cin, period)         # free: row-major contiguous

    # --- kernel 2: streaming multiply ----------------------------------------------------
    c_blk, m = _pick_stream_blocks(Cin, P, period, x2.dtype.itemsize,
                                   jnp.dtype(gate_dtype).itemsize,
                                   target_bytes=target_block_bytes)
    steady = (4 * c_blk * m * period * x2.dtype.itemsize
              + 2 * c_blk * period * jnp.dtype(gate_dtype).itemsize)
    if steady > vmem_limit_bytes:
        raise ValueError(
            f"attention_gate: smallest legal streaming block needs ~{steady} bytes of VMEM, "
            f"above the {vmem_limit_bytes}-byte limit; reduce channels/spatial size.")

    x2r = x2.reshape(B, Cin, P, period)               # free: row-major contiguous
    out = pl.pallas_call(
        _apply_gate_kernel,
        out_shape=jax.ShapeDtypeStruct((B, Cin, P, period), x2.dtype),
        grid=(B, Cin // c_blk, P // m),
        in_specs=[
            pl.BlockSpec((None, c_blk, period), lambda b, c, n: (b, c, 0)),
            pl.BlockSpec((None, c_blk, m, period), lambda b, c, n: (b, c, n, 0)),
        ],
        out_specs=pl.BlockSpec((None, c_blk, m, period), lambda b, c, n: (b, c, n, 0)),
        compiler_params=pltpu.CompilerParams(
            dimension_semantics=("parallel", "parallel", "parallel"),
            vmem_limit_bytes=vmem_limit_bytes,
        ),
    )(gate_flat, x2r)
    return out.reshape(B, Cin, H2, W2x)


def reference(x2, x1, wm, bias, gamma, beta, rmean, rvar, eps, k):
    # Pure-JAX NCHW reference mirroring the PyTorch forward (BN in eval mode).
    B, Cout, H1, W1 = x1.shape
    P, Q = H1 // k, W1 // k
    pooled = x1.reshape(B, Cout, P, k, Q, k).mean(axis=(3, 5))
    conv = jnp.einsum('bcpq,dc->bdpq', pooled, wm) + bias[None, :, None, None]
    bn = gamma[None, :, None, None] * (conv - rmean[None, :, None, None]) \
        / jnp.sqrt(rvar[None, :, None, None] + eps) + beta[None, :, None, None]
    a = jnp.maximum(bn, 0.0)                          # (B, Cin, P, Q)
    a_tiled = jnp.tile(a, (1, 1, P, Q))               # torch .repeat(1, P, Q) semantics
    return a_tiled * x2


if __name__ == "__main__":
    B, in_ch, out_ch, ksz = 2, 4, 8, 2
    H1 = W1 = 8                       # x1 spatial (before AvgPool)
    P = Q = H1 // ksz                 # pooled spatial
    H2, W2 = P * P, Q * Q             # x2 spatial required by the .repeat semantics
    eps = 1e-5

    key = jax.random.PRNGKey(0)
    k0, k1, k2_, k3, k4, k5, k6, k7 = jax.random.split(key, 8)
    x1 = jax.random.normal(k0, (B, out_ch, H1, W1), jnp.float32)
    x2 = jax.random.normal(k1, (B, in_ch, H2, W2), jnp.float32)
    wm = 0.1 * jax.random.normal(k2_, (in_ch, out_ch), jnp.float32)   # Conv2d(out_ch->in_ch, 1x1)
    bias = 0.1 * jax.random.normal(k3, (in_ch,), jnp.float32)
    gamma = 1.0 + 0.1 * jax.random.normal(k4, (in_ch,), jnp.float32)
    beta = 0.1 * jax.random.normal(k5, (in_ch,), jnp.float32)
    rmean = 0.1 * jax.random.normal(k6, (in_ch,), jnp.float32)
    rvar = 0.5 + jax.random.uniform(k7, (in_ch,), jnp.float32)

    ref = reference(x2, x1, wm, bias, gamma, beta, rmean, rvar, eps, ksz)

    out = attention_gate_forward(x2, x1, wm, bias, gamma, beta, rmean, rvar, eps, ksz)
    out = jax.block_until_ready(out)

    assert out.shape == (B, in_ch, H2, W2)
    err = float(jnp.max(jnp.abs(out - ref)))
    assert err < 1e-3, f"mismatch vs reference: {err}"
    print("KERNEL_OK")
</pallas_src>

<mosaic_0001>
module attributes {stable_mosaic.version = 11 : i64} {
  func.func @_gate_kernel(%arg0: i32, %arg1: memref<1x4x4x8x4xf32, #tpu.memory_space<vmem>>, %arg2: memref<4x8xf32, #tpu.memory_space<vmem>>, %arg3: memref<4x1xf32, #tpu.memory_space<vmem>>, %arg4: memref<4x16xf32, #tpu.memory_space<vmem>>, %arg5: memref<1x4x4x16xf32, #tpu.memory_space<vmem>>) attributes {dimension_semantics = [#tpu.dimension_semantics<parallel>], iteration_bounds = array<i64: 2>, scalar_prefetch = 0 : i64, scratch_operands = 0 : i64, tpu.core_type = #tpu.core_type<tc>, window_params = [{transform_indices = @transform_0, window_bounds = array<i64: 1, 4, 4, 8, 4>}, {pipeline_mode = #tpu.pipeline_mode<synchronous>, transform_indices = @transform_1, window_bounds = array<i64: 4, 8>}, {pipeline_mode = #tpu.pipeline_mode<synchronous>, transform_indices = @transform_2, window_bounds = array<i64: 4, 1>}, {pipeline_mode = #tpu.pipeline_mode<synchronous>, transform_indices = @transform_3, window_bounds = array<i64: 4, 16>}, {transform_indices = @transform_4, window_bounds = array<i64: 1, 4, 4, 16>}]} {
    %c0 = arith.constant 0 : index
    %c0_0 = arith.constant 0 : index
    %c0_1 = arith.constant 0 : index
    %c0_2 = arith.constant 0 : index
    %c0_3 = arith.constant 0 : index
    %0 = vector.load %arg1[%c0, %c0_0, %c0_1, %c0_2, %c0_3] : memref<1x4x4x8x4xf32, #tpu.memory_space<vmem>>, vector<1x1x4x8x4xf32>
    %1 = vector.shape_cast %0 : vector<1x1x4x8x4xf32> to vector<4x8x4xf32>
    %c0_4 = arith.constant 0 : index
    %c1 = arith.constant 1 : index
    %c0_5 = arith.constant 0 : index
    %c0_6 = arith.constant 0 : index
    %c0_7 = arith.constant 0 : index
    %2 = vector.load %arg1[%c0_4, %c1, %c0_5, %c0_6, %c0_7] : memref<1x4x4x8x4xf32, #tpu.memory_space<vmem>>, vector<1x1x4x8x4xf32>
    %3 = vector.shape_cast %2 : vector<1x1x4x8x4xf32> to vector<4x8x4xf32>
    %4 = arith.addf %1, %3 : vector<4x8x4xf32>
    %c0_8 = arith.constant 0 : index
    %c2 = arith.constant 2 : index
    %c0_9 = arith.constant 0 : index
    %c0_10 = arith.constant 0 : index
    %c0_11 = arith.constant 0 : index
    %5 = vector.load %arg1[%c0_8, %c2, %c0_9, %c0_10, %c0_11] : memref<1x4x4x8x4xf32, #tpu.memory_space<vmem>>, vector<1x1x4x8x4xf32>
    %6 = vector.shape_cast %5 : vector<1x1x4x8x4xf32> to vector<4x8x4xf32>
    %7 = arith.addf %4, %6 : vector<4x8x4xf32>
    %c0_12 = arith.constant 0 : index
    %c3 = arith.constant 3 : index
    %c0_13 = arith.constant 0 : index
    %c0_14 = arith.constant 0 : index
    %c0_15 = arith.constant 0 : index
    %8 = vector.load %arg1[%c0_12, %c3, %c0_13, %c0_14, %c0_15] : memref<1x4x4x8x4xf32, #tpu.memory_space<vmem>>, vector<1x1x4x8x4xf32>
    %9 = vector.shape_cast %8 : vector<1x1x4x8x4xf32> to vector<4x8x4xf32>
    %10 = arith.addf %7, %9 : vector<4x8x4xf32>
    %cst = arith.constant 2.500000e-01 : f32
    %11 = vector.broadcast %cst : f32 to vector<4x8x4xf32>
    %12 = arith.mulf %10, %11 : vector<4x8x4xf32>
    %c0_16 = arith.constant 0 : index
    %c0_17 = arith.constant 0 : index
    %13 = vector.load %arg2[%c0_16, %c0_17] : memref<4x8xf32, #tpu.memory_space<vmem>>, vector<4x8xf32>
    %c0_18 = arith.constant 0 : index
    %c0_19 = arith.constant 0 : index
    %14 = vector.load %arg3[%c0_18, %c0_19] : memref<4x1xf32, #tpu.memory_space<vmem>>, vector<4x1xf32>
    %c0_20 = arith.constant 0 : index
    %c0_21 = arith.constant 0 : index
    %15 = vector.load %arg4[%c0_20, %c0_21] : memref<4x16xf32, #tpu.memory_space<vmem>>, vector<4x16xf32>
    %16 = vector.extract_strided_slice %12 {offsets = [0, 0, 0], sizes = [1, 8, 4], strides = [1, 1, 1]} : vector<4x8x4xf32> to vector<1x8x4xf32>
    %17 = vector.shape_cast %16 : vector<1x8x4xf32> to vector<8x4xf32>
    %cst_22 = arith.constant dense<0.000000e+00> : vector<4x4xf32>
    %18 = tpu.matmul %13, %17, %cst_22 {dimension_numbers = #tpu.dot_dimension_numbers<[1], [0], [0], [1], [0, 0, 1, 1], [], []>} : vector<4x8xf32>, vector<8x4xf32>, vector<4x4xf32> -> vector<4x4xf32>
    %19 = vector.broadcast %14 : vector<4x1xf32> to vector<4x4xf32>
    %20 = arith.addf %18, %19 : vector<4x4xf32>
    %cst_23 = arith.constant 0.000000e+00 : f32
    %21 = vector.broadcast %cst_23 : f32 to vector<4x4xf32>
    %22 = arith.maximumf %20, %21 : vector<4x4xf32>
    %cst_24 = arith.constant dense<0.000000e+00> : vector<4x16xf32>
    %23 = tpu.matmul %22, %15, %cst_24 {dimension_numbers = #tpu.dot_dimension_numbers<[1], [0], [0], [1], [0, 0, 1, 1], [], []>} : vector<4x4xf32>, vector<4x16xf32>, vector<4x16xf32> -> vector<4x16xf32>
    %c0_25 = arith.constant 0 : index
    %c0_26 = arith.constant 0 : index
    %c0_27 = arith.constant 0 : index
    %c0_28 = arith.constant 0 : index
    %24 = vector.load %arg5[%c0_25, %c0_26, %c0_27, %c0_28] : memref<1x4x4x16xf32, #tpu.memory_space<vmem>>, vector<1x4x1x16xf32>
    %25 = vector.shape_cast %24 : vector<1x4x1x16xf32> to vector<4x16xf32>
    %26 = vector.shape_cast %23 : vector<4x16xf32> to vector<1x4x1x16xf32>
    tpu.vector_store %arg5[%c0_25, %c0_26, %c0_27, %c0_28], %26 {strides = array<i32>} : memref<1x4x4x16xf32, #tpu.memory_space<vmem>>, vector<1x4x1x16xf32>,
    %27 = vector.extract_strided_slice %12 {offsets = [1, 0, 0], sizes = [1, 8, 4], strides = [1, 1, 1]} : vector<4x8x4xf32> to vector<1x8x4xf32>
    %28 = vector.shape_cast %27 : vector<1x8x4xf32> to vector<8x4xf32>
    %cst_29 = arith.constant dense<0.000000e+00> : vector<4x4xf32>
    %29 = tpu.matmul %13, %28, %cst_29 {dimension_numbers = #tpu.dot_dimension_numbers<[1], [0], [0], [1], [0, 0, 1, 1], [], []>} : vector<4x8xf32>, vector<8x4xf32>, vector<4x4xf32> -> vector<4x4xf32>
    %30 = vector.broadcast %14 : vector<4x1xf32> to vector<4x4xf32>
    %31 = arith.addf %29, %30 : vector<4x4xf32>
    %cst_30 = arith.constant 0.000000e+00 : f32
    %32 = vector.broadcast %cst_30 : f32 to vector<4x4xf32>
    %33 = arith.maximumf %31, %32 : vector<4x4xf32>
    %cst_31 = arith.constant dense<0.000000e+00> : vector<4x16xf32>
    %34 = tpu.matmul %33, %15, %cst_31 {dimension_numbers = #tpu.dot_dimension_numbers<[1], [0], [0], [1], [0, 0, 1, 1], [], []>} : vector<4x4xf32>, vector<4x16xf32>, vector<4x16xf32> -> vector<4x16xf32>
    %c0_32 = arith.constant 0 : index
    %c0_33 = arith.constant 0 : index
    %c1_34 = arith.constant 1 : index
    %c0_35 = arith.constant 0 : index
    %35 = vector.load %arg5[%c0_32, %c0_33, %c1_34, %c0_35] : memref<1x4x4x16xf32, #tpu.memory_space<vmem>>, vector<1x4x1x16xf32>
    %36 = vector.shape_cast %35 : vector<1x4x1x16xf32> to vector<4x16xf32>
    %37 = vector.shape_cast %34 : vector<4x16xf32> to vector<1x4x1x16xf32>
    tpu.vector_store %arg5[%c0_32, %c0_33, %c1_34, %c0_35], %37 {strides = array<i32>} : memref<1x4x4x16xf32, #tpu.memory_space<vmem>>, vector<1x4x1x16xf32>,
    %38 = vector.extract_strided_slice %12 {offsets = [2, 0, 0], sizes = [1, 8, 4], strides = [1, 1, 1]} : vector<4x8x4xf32> to vector<1x8x4xf32>
    %39 = vector.shape_cast %38 : vector<1x8x4xf32> to vector<8x4xf32>
    %cst_36 = arith.constant dense<0.000000e+00> : vector<4x4xf32>
    %40 = tpu.matmul %13, %39, %cst_36 {dimension_numbers = #tpu.dot_dimension_numbers<[1], [0], [0], [1], [0, 0, 1, 1], [], []>} : vector<4x8xf32>, vector<8x4xf32>, vector<4x4xf32> -> vector<4x4xf32>
    %41 = vector.broadcast %14 : vector<4x1xf32> to vector<4x4xf32>
    %42 = arith.addf %40, %41 : vector<4x4xf32>
    %cst_37 = arith.constant 0.000000e+00 : f32
    %43 = vector.broadcast %cst_37 : f32 to vector<4x4xf32>
    %44 = arith.maximumf %42, %43 : vector<4x4xf32>
    %cst_38 = arith.constant dense<0.000000e+00> : vector<4x16xf32>
    %45 = tpu.matmul %44, %15, %cst_38 {dimension_numbers = #tpu.dot_dimension_numbers<[1], [0], [0], [1], [0, 0, 1, 1], [], []>} : vector<4x4xf32>, vector<4x16xf32>, vector<4x16xf32> -> vector<4x16xf32>
    %c0_39 = arith.constant 0 : index
    %c0_40 = arith.constant 0 : index
    %c2_41 = arith.constant 2 : index
    %c0_42 = arith.constant 0 : index
    %46 = vector.load %arg5[%c0_39, %c0_40, %c2_41, %c0_42] : memref<1x4x4x16xf32, #tpu.memory_space<vmem>>, vector<1x4x1x16xf32>
    %47 = vector.shape_cast %46 : vector<1x4x1x16xf32> to vector<4x16xf32>
    %48 = vector.shape_cast %45 : vector<4x16xf32> to vector<1x4x1x16xf32>
    tpu.vector_store %arg5[%c0_39, %c0_40, %c2_41, %c0_42], %48 {strides = array<i32>} : memref<1x4x4x16xf32, #tpu.memory_space<vmem>>, vector<1x4x1x16xf32>,
    %49 = vector.extract_strided_slice %12 {offsets = [3, 0, 0], sizes = [1, 8, 4], strides = [1, 1, 1]} : vector<4x8x4xf32> to vector<1x8x4xf32>
    %50 = vector.shape_cast %49 : vector<1x8x4xf32> to vector<8x4xf32>
    %cst_43 = arith.constant dense<0.000000e+00> : vector<4x4xf32>
    %51 = tpu.matmul %13, %50, %cst_43 {dimension_numbers = #tpu.dot_dimension_numbers<[1], [0], [0], [1], [0, 0, 1, 1], [], []>} : vector<4x8xf32>, vector<8x4xf32>, vector<4x4xf32> -> vector<4x4xf32>
    %52 = vector.broadcast %14 : vector<4x1xf32> to vector<4x4xf32>
    %53 = arith.addf %51, %52 : vector<4x4xf32>
    %cst_44 = arith.constant 0.000000e+00 : f32
    %54 = vector.broadcast %cst_44 : f32 to vector<4x4xf32>
    %55 = arith.maximumf %53, %54 : vector<4x4xf32>
    %cst_45 = arith.constant dense<0.000000e+00> : vector<4x16xf32>
    %56 = tpu.matmul %55, %15, %cst_45 {dimension_numbers = #tpu.dot_dimension_numbers<[1], [0], [0], [1], [0, 0, 1, 1], [], []>} : vector<4x4xf32>, vector<4x16xf32>, vector<4x16xf32> -> vector<4x16xf32>
    %c0_46 = arith.constant 0 : index
    %c0_47 = arith.constant 0 : index
    %c3_48 = arith.constant 3 : index
    %c0_49 = arith.constant 0 : index
    %57 = vector.load %arg5[%c0_46, %c0_47, %c3_48, %c0_49] : memref<1x4x4x16xf32, #tpu.memory_space<vmem>>, vector<1x4x1x16xf32>
    %58 = vector.shape_cast %57 : vector<1x4x1x16xf32> to vector<4x16xf32>
    %59 = vector.shape_cast %56 : vector<4x16xf32> to vector<1x4x1x16xf32>
    tpu.vector_store %arg5[%c0_46, %c0_47, %c3_48, %c0_49], %59 {strides = array<i32>} : memref<1x4x4x16xf32, #tpu.memory_space<vmem>>, vector<1x4x1x16xf32>,
    return
  }
  func.func @transform_0(%arg0: i32) -> (i32, i32, i32, i32, i32) {
    %c0_i32 = arith.constant 0 : i32
    %c0_i32_0 = arith.constant 0 : i32
    %c0_i32_1 = arith.constant 0 : i32
    %c0_i32_2 = arith.constant 0 : i32
    %c0_i32_3 = arith.constant 0 : i32
    return %arg0, %c0_i32, %c0_i32_0, %c0_i32_1, %c0_i32_2 : i32, i32, i32, i32, i32
  }
  func.func @transform_1(%arg0: i32) -> (i32, i32) {
    %c0_i32 = arith.constant 0 : i32
    %c0_i32_0 = arith.constant 0 : i32
    %c0_i32_1 = arith.constant 0 : i32
    return %c0_i32, %c0_i32_0 : i32, i32
  }
  func.func @transform_2(%arg0: i32) -> (i32, i32) {
    %c0_i32 = arith.constant 0 : i32
    %c0_i32_0 = arith.constant 0 : i32
    %c0_i32_1 = arith.constant 0 : i32
    return %c0_i32, %c0_i32_0 : i32, i32
  }
  func.func @transform_3(%arg0: i32) -> (i32, i32) {
    %c0_i32 = arith.constant 0 : i32
    %c0_i32_0 = arith.constant 0 : i32
    %c0_i32_1 = arith.constant 0 : i32
    return %c0_i32, %c0_i32_0 : i32, i32
  }
  func.func @transform_4(%arg0: i32) -> (i32, i32, i32, i32) {
    %c0_i32 = arith.constant 0 : i32
    %c0_i32_0 = arith.constant 0 : i32
    %c0_i32_1 = arith.constant 0 : i32
    %c0_i32_2 = arith.constant 0 : i32
    return %arg0, %c0_i32, %c0_i32_0, %c0_i32_1 : i32, i32, i32, i32
  }
}

</mosaic_0001>

<bundles_post_ra>
// kernel: tpu_custom_call.1
= control target key start
LH: loop header
LB: loop body
LE: loop exit
PB: predicated region body
PF: predicated region fallthrough
CT: control target
= control target key end

     0   :  { %9 = vsyncpa [#allocation3], 0  ;;  %s1474_s0 = inlined_call_operand.vmem [shape: f32[2,4,4,8,4], index: 0, kind: input, shape index: {}]   ;;  %s1475_s1 = inlined_call_operand.vmem [shape: f32[4,8], index: 1, kind: input, shape index: {}]   ;;  %s1476_s2 = inlined_call_operand.vmem [shape: f32[4,1], index: 2, kind: input, shape index: {}]   ;;  %s1477_s3 = inlined_call_operand.vmem [shape: f32[4,16], index: 3, kind: input, shape index: {}]   ;;  %s1478_s4 = inlined_call_operand.hbm [shape: f32[2,4,4,16], index: 4, kind: output, shape index: {}]  }
   0x1   :  { %11 = vsyncpa [#allocation3 + $0x1], 0  ;;  %s1269_s15 = smov 0   ;;  %s1271_s16 = smov 0  }
   0x2   :  { %s1273_s17 = smov 0   ;;  %s1275_s18 = smov 0  }
   0x3 LB: > { %s1290_s19 = sadd.s32 4294967295, %s1235_s18   ;;  %s1033_s20 = sadd.s32 4294967294, %s1235_s18   ;;  %s1235_s18 = sphi %s1275_s18, %s1484_s18   ;;  %s1231_s17 = sphi %s1273_s17, %s1483_s17   ;;  %s1227_s16 = sphi %s1271_s16, %s1482_s16   ;;  %s1223_s15 = sphi %s1269_s15, %s1481_s15  }
   0x4   : > { %s1294_s21 = sadd.s32 1, %s1235_s18   ;;  %s113_s22 = sadd.s32 1, %s1231_s17 }
   0x5   : > { %s110_s23 = ssub.s32 %s1235_s18, %s1294_s21  ;;  %p123_p0 = scmp.ne.s32.totalorder %s1231_s17, %s1227_s16 }
   0x6   : > { %p111_p1 = scmp.eq.s32.totalorder %s110_s23, 0  ;;  %p124_p2 = scmp.eq.s32.totalorder %s1290_s19, 1 }
   0x7   : > { %p129_p3 = scmp.ne.s32.totalorder %s1227_s16, %s1223_s15  ;;  %p130_p4 = scmp.eq.s32.totalorder %s1033_s20, 1 }
   0x8   : > { %s1305_s24 = scalar_select %p111_p1, %s1231_s17, %s113_s22  }
   0x9   : > { %p1307_p5 = por %p124_p2, %p123_p0  ;;  %p1311_p6 = por %p130_p4, %p129_p3 }
   0xa   : > { %p1036_p7 = scmp.ge.s32.totalorder %s1235_s18, 1  ;;  %p165_p8 = scmp.lt.s32.totalorder %s1235_s18, 3 }
   0xc   : > { %p166_p9 = pnand %p1036_p7, %p165_p8 }
   0xd   : > { %p191_p10 = scmp.lt.s32.totalorder (!%p166_p9), %s1290_s19, 1  ;;  %v1237_v0 = vmov (!%p166_p9), 0.0   ;;  %vm1238_vm0 = vmmov (!%p166_p9), 0   ;;  %v232_v1 = vld [vmem:[%s1476_s2] sm:$0xf] (!%p166_p9)  ;;  %v1239_v2 = vmov (!%p166_p9), 0   ;;  %v396_v56 = vlaneseq (!%p166_p9) }
   0xe   : > { %169 = sbr.rel (%p166_p9) target bundleno = 499 (0x1f3), region = 36  ;;  %1087 = vmatprep.subr.mxu0 (!%p166_p9), %v1237_v0  ;;  %1089 = vmatprep.mubr.msk.f32.mxu0 (!%p166_p9), %vm1238_vm0, %v1237_v0  ;;  %v231_v28 = vld [vmem:[%s1475_s1] sm:$0xf] (!%p166_p9)  ;;  %vm239_vm1 = vcmask (!%p166_p9), 64512   ;;  %vm318_vm2 = vcmask (!%p166_p9), 1043456   ;;  %vm314_vm3 = vcmask (!%p166_p9), 31744  }
   0xf   : > { %1172 = vset.pattern.permute.xlu0 (!%p166_p9), %v1239_v2  ;;  %1092 = vmatprep.subr.mxu1 (!%p166_p9), %v1237_v0  ;;  %v233_v36 = vld [vmem:[%s1477_s3] sm:$0xf] (!%p166_p9)  ;;  %v1240_v54 = vmov (!%p166_p9), 1966171168   ;;  %v397_v58 = vshrl.u32 (!%p166_p9), %v396_v56, 7  ;;  %s188_s12 = sand.u32 (!%p166_p9), 1, %s1227_s16  }
  0x10   : > { %236 = vperm.xlu0 (!%p166_p9), %1172, %v232_v1   ;;  %1094 = vmatprep.mubr.msk.f32.mxu1 (!%p166_p9), %vm1238_vm0, %v1237_v0  ;;  %v394_v55 = vunpack.c.l.s4 (!%p166_p9), %v1240_v54  ;;  %s1037_s13 = sshll.u32 (!%p166_p9), %s188_s12, 4  ;;  %vm421_vm4 = vcmask (!%p166_p9), 122880   ;;  %s1070_s20 = sshll.u32 (!%p166_p9), %s1290_s19, 8 }
  0x11   : > { %1093 = vmatpush3.msk.msra.mxu1 (!%p166_p9), %vm318_vm2, %v233_v36  ;;  %s1388_s14 = scalar_lea.vmem (!%p166_p9), [#allocation2], %s1037_s13  ;;  %s1421_s28 = scalar_lea.hbm (!%p166_p9), %s1478_s4, %s1070_s20 }
  0x12   : > { %1102 = vmatprep.subr.mxu1 (!%p166_p9), %v1237_v0  ;;  %v395_v57 = vunpack.c.0.s8 (!%p166_p9), %v394_v55  ;;  %s971_s22 = sshll.u32 (!%p166_p9), %s1388_s14, 4  ;;  %s1423_s22 = int_to_ptr.vmem [resolvable:$true] %s971_s22 }
  0x14   : > { %v398_v59 = vsub.s32 (!%p166_p9), %v395_v57, %v397_v58 }
  0x15   : > { %s192_s29 = scalar_select %p191_p10, %s1290_s19, 1 }
  0x16   : > { %s1433_s19 = scalar_lea.sflag [#allocation3], %s188_s12 }
  0x17   : > { %s1069_s30 = sshll.u32 %s192_s29, 7  ;;  %s1173_s29 = scalar_lea.vmem %s1423_s22, 256 }
  0x18   : > { %s1331_s7 = scalar_lea.vmem %s1474_s0, %s1069_s30  ;;  %p1174_p11 = scmp.ne.s32.totalorder %s1423_s22, %s1173_s29 }
  0x19   : > { %v196_v3 = vld [vmem:[%s1331_s7] sm:$0xff]  ;;  %v197_v7 = vld [vmem:[%s1331_s7 + $0x8] sm:$0xff]  ;;  %v198_v12 = vld [vmem:[%s1331_s7 + $0x10] sm:$0xff]  ;;  %s1241_s30 = smov [#allocation2]  }
  0x1a   : > { %v1040_v4 = vld [vmem:[%s1331_s7 + $0x20] sm:$0xff]  ;;  %v1041_v8 = vld [vmem:[%s1331_s7 + $0x28] sm:$0xff]  ;;  %v1042_v15 = vld [vmem:[%s1331_s7 + $0x30] sm:$0xff]  ;;  %p1175_p12 = pnand %p1174_p11, %p1307_p5  ;;  %s1177_s5 = sshll.u32 %s1241_s30, 4  ;;  %s1178_s5 = int_to_ptr.vmem [resolvable:$false] %s1177_s5 }
  0x1b   : > { %v1044_v5 = vld [vmem:[%s1331_s7 + $0x40] sm:$0xff]  ;;  %v205_v6 = vadd.f32 %v1040_v4, %v196_v3  ;;  %v206_v10 = vadd.f32 %v1041_v8, %v197_v7  ;;  %v1045_v11 = vld [vmem:[%s1331_s7 + $0x48] sm:$0xff]  ;;  %v1046_v16 = vld [vmem:[%s1331_s7 + $0x50] sm:$0xff]  ;;  %v207_v18 = vadd.f32 %v1042_v15, %v198_v12  ;;  %s1179_s6 = scalar_lea.vmem %s1178_s5, 512  ;;  %p1180_p0 = scmp.lt.s32.totalorder %s1423_s22, %s1178_s5 }
  0x1c   : > { %v1048_v9 = vld [vmem:[%s1331_s7 + $0x60] sm:$0xff]  ;;  %v1049_v14 = vld [vmem:[%s1331_s7 + $0x68] sm:$0xff]  ;;  %v199_v19 = vld [vmem:[%s1331_s7 + $0x18] sm:$0xff]  ;;  %p1176_p13 = pneg %p1175_p12  ;;  %p1181_p1 = scmp.lt.s32.totalorder %s1179_s6, %s1173_s29 }
  0x1d   : > { %v214_v13 = vadd.f32 %v1044_v5, %v205_v6  ;;  %v215_v17 = vadd.f32 %v1045_v11, %v206_v10  ;;  %v1043_v20 = vld [vmem:[%s1331_s7 + $0x38] sm:$0xff]  ;;  %v1050_v23 = vld [vmem:[%s1331_s7 + $0x70] sm:$0xff]  ;;  %v216_v26 = vadd.f32 %v1046_v16, %v207_v18 }
  0x1e   : > { %v1047_v21 = vld [vmem:[%s1331_s7 + $0x58] sm:$0xff]  ;;  %v208_v24 = vadd.f32 %v1043_v20, %v199_v19  ;;  %p1182_p2 = por %p1181_p1, %p1180_p0 }
  0x1f   : > { %v223_v22 = vadd.f32 %v1048_v9, %v214_v13  ;;  %v224_v25 = vadd.f32 %v1049_v14, %v215_v17  ;;  %v225_v31 = vadd.f32 %v1050_v23, %v216_v26  ;;  %v1051_v32 = vld [vmem:[%s1331_s7 + $0x78] sm:$0xff] }
  0x20   : > { %v217_v29 = vadd.f32 %v1047_v21, %v208_v24  ;;  %p1183_p3 = pnand %p1182_p2, %p1176_p13 }
  0x21   : > { %v227_v27 = vmul.f32 0.25, %v223_v22  ;;  %v228_v30 = vmul.f32 0.25, %v224_v25  ;;  %v229_v33 = vmul.f32 0.25, %v225_v31 }
  0x22   : > { %v226_v34 = vadd.f32 %v1051_v32, %v217_v29 }
  0x23   : > { %1088 = vmatpush3.msra.mxu0 %v227_v27 }
  0x24   : > { %1090 = vmatmul.mubr.msk.f32.vlgmr.msra.gmra.mrb[0].mxu0 %vm239_vm1, %v231_v28  ;;  %1097 = vmatprep.subr.mxu0 %v1237_v0  ;;  %v230_v35 = vmul.f32 0.25, %v226_v34 }
  0x25   : > { %1098 = vmatpush3.msra.mxu0 %v228_v30  ;;  %1099 = vmatprep.mubr.msk.f32.mxu0 %vm1238_vm0, %v1237_v0 }
  0x26   : > { %1107 = vmatprep.subr.mxu0 %v1237_v0 }
  0x28   : > { %1100 = vmatmul.mubr.msk.f32.vlgmr.msra.gmra.mrb[2].mxu0 %vm239_vm1, %v231_v28 }
  0x29   : > { %1108 = vmatpush3.msra.mxu0 %v229_v33  ;;  %1109 = vmatprep.mubr.msk.f32.mxu0 %vm1238_vm0, %v1237_v0 }
  0x2a   : > { %1117 = vmatprep.subr.mxu0 %v1237_v0 }
  0x2c   : > { %1110 = vmatmul.mubr.msk.f32.vlgmr.msra.gmra.mrb[4].mxu0 %vm239_vm1, %v231_v28 }
  0x2d   : > { %1118 = vmatpush3.msra.mxu0 %v230_v35  ;;  %1119 = vmatprep.mubr.msk.f32.mxu0 %vm1238_vm0, %v1237_v0 }
  0x30   : > { %1120 = vmatmul.mubr.msk.f32.vlgmr.msra.gmra.mrb[6].mxu0 %vm239_vm1, %v231_v28 }
  0x8f   : > { %v237_v37 = vpop.permute.xlu0 %236 }
  0xf7   : > { %v309_v38 = vpop.f32.mrb[0].mxu0 }
  0xf8   : > { %v310_v39 = vadd.f32 %v309_v38, %v237_v37  ;;  %v1091_v40 = vpop.f32.mrb[1].mxu0 }
  0xfa   : > { %v313_v41 = vmax.f32 %v310_v39, 0.0 }
  0xfb   : > { %v492_v42 = vpop.f32.mrb[2].mxu0 }
  0xfc   : > { %v493_v43 = vadd.f32 %v492_v42, %v237_v37  ;;  %1095 = vmatmul.mubr.msk.f32.vlgmr.msra.gmra.mrb[0].mxu1 %vm314_vm3, %v313_v41  ;;  %v1101_v44 = vpop.f32.mrb[3].mxu0 }
  0xfd   : > { %1103 = vmatpush3.msk.msra.mxu1 %vm318_vm2, %v233_v36  ;;  %1104 = vmatprep.mubr.msk.f32.mxu1 %vm1238_vm0, %v1237_v0 }
  0xfe   : > { %v496_v45 = vmax.f32 %v493_v43, 0.0  ;;  %1112 = vmatprep.subr.mxu1 %v1237_v0 }
  0xff   : > { %v669_v46 = vpop.f32.mrb[4].mxu0 }
 0x100   : > { %v670_v47 = vadd.f32 %v669_v46, %v237_v37  ;;  %1105 = vmatmul.mubr.msk.f32.vlgmr.msra.gmra.mrb[2].mxu1 %vm314_vm3, %v496_v45  ;;  %v1111_v48 = vpop.f32.mrb[5].mxu0 }
 0x101   : > { %1113 = vmatpush3.msk.msra.mxu1 %vm318_vm2, %v233_v36  ;;  %1114 = vmatprep.mubr.msk.f32.mxu1 %vm1238_vm0, %v1237_v0 }
 0x102   : > { %v673_v49 = vmax.f32 %v670_v47, 0.0  ;;  %1122 = vmatprep.subr.mxu1 %v1237_v0 }
 0x103   : > { %v846_v50 = vpop.f32.mrb[6].mxu0 }
 0x104   : > { %v847_v51 = vadd.f32 %v846_v50, %v237_v37  ;;  %1115 = vmatmul.mubr.msk.f32.vlgmr.msra.gmra.mrb[4].mxu1 %vm314_vm3, %v673_v49  ;;  %v1121_v52 = vpop.f32.mrb[7].mxu0 }
 0x105   : > { %1123 = vmatpush3.msk.msra.mxu1 %vm318_vm2, %v233_v36  ;;  %1124 = vmatprep.mubr.msk.f32.mxu1 %vm1238_vm0, %v1237_v0 }
 0x106   : > { %v850_v53 = vmax.f32 %v847_v51, 0.0 }
 0x108   : > { %1125 = vmatmul.mubr.msk.f32.vlgmr.msra.gmra.mrb[6].mxu1 %vm314_vm3, %v850_v53 }
 0x1cf   : > { %v388_v60 = vpop.f32.mrb[0].mxu1 }
 0x1d0   : > { %v399_v61 = vrot.slane %v388_v60, %v398_v59  ;;  %v1096_v62 = vpop.f32.mrb[1].mxu1 }
 0x1d2   : > { %v400_v63 = vcombine.high %v399_v61, %v399_v61  ;;  %v407_v1 = vrot.slane %v399_v61, %v398_v59 }
 0x1d3   : > { %v566_v2 = vpop.f32.mrb[2].mxu1 }
 0x1d4   : > { %v414_v0 = vrot.slane %v400_v63, %v398_v59  ;;  %v415_v3 = vcombine.high %v407_v1, %v407_v1  ;;  %422 = vst.msk [vmem:[%s1388_s14] sm:$0x1] %vm421_vm4, %v407_v1  ;;  %v577_v4 = vrot.slane %v566_v2, %v398_v59  ;;  %v1106_v5 = vpop.f32.mrb[3].mxu1 }
 0x1d6   : > { %v416_v6 = vcombine.high %v414_v0, %v414_v0  ;;  %423 = vst.msk [vmem:[%s1388_s14 + $0x4] sm:$0x1] %vm421_vm4, %v414_v0  ;;  %424 = vst.msk [vmem:[%s1388_s14 + $0x8] sm:$0x1] %vm421_vm4, %v415_v3  ;;  %v578_v7 = vcombine.high %v577_v4, %v577_v4  ;;  %v585_v8 = vrot.slane %v577_v4, %v398_v59 }
 0x1d7   : > { %v743_v9 = vpop.f32.mrb[4].mxu1 }
 0x1d8   : > { %425 = vst.msk [vmem:[%s1388_s14 + $0xc] sm:$0x1] %vm421_vm4, %v416_v6  ;;  %v592_v10 = vrot.slane %v578_v7, %v398_v59  ;;  %v593_v11 = vcombine.high %v585_v8, %v585_v8  ;;  %599 = vst.msk [vmem:[%s1388_s14 + $0x1] sm:$0x1] %vm421_vm4, %v585_v8  ;;  %v754_v12 = vrot.slane %v743_v9, %v398_v59  ;;  %v1116_v13 = vpop.f32.mrb[5].mxu1 }
 0x1da   : > { %v594_v14 = vcombine.high %v592_v10, %v592_v10  ;;  %600 = vst.msk [vmem:[%s1388_s14 + $0x5] sm:$0x1] %vm421_vm4, %v592_v10  ;;  %601 = vst.msk [vmem:[%s1388_s14 + $0x9] sm:$0x1] %vm421_vm4, %v593_v11  ;;  %v755_v15 = vcombine.high %v754_v12, %v754_v12  ;;  %v762_v16 = vrot.slane %v754_v12, %v398_v59 }
 0x1db   : > { %v920_v17 = vpop.f32.mrb[6].mxu1 }
 0x1dc   : > { %602 = vst.msk [vmem:[%s1388_s14 + $0xd] sm:$0x1] %vm421_vm4, %v594_v14  ;;  %v769_v18 = vrot.slane %v755_v15, %v398_v59  ;;  %v770_v19 = vcombine.high %v762_v16, %v762_v16  ;;  %776 = vst.msk [vmem:[%s1388_s14 + $0x2] sm:$0x1] %vm421_vm4, %v762_v16  ;;  %v931_v20 = vrot.slane %v920_v17, %v398_v59  ;;  %v1126_v21 = vpop.f32.mrb[7].mxu1 }
 0x1de   : > { %v771_v22 = vcombine.high %v769_v18, %v769_v18  ;;  %777 = vst.msk [vmem:[%s1388_s14 + $0x6] sm:$0x1] %vm421_vm4, %v769_v18  ;;  %778 = vst.msk [vmem:[%s1388_s14 + $0xa] sm:$0x1] %vm421_vm4, %v770_v19  ;;  %v932_v23 = vcombine.high %v931_v20, %v931_v20  ;;  %v939_v24 = vrot.slane %v931_v20, %v398_v59 }
 0x1e0   : > { %779 = vst.msk [vmem:[%s1388_s14 + $0xe] sm:$0x1] %vm421_vm4, %v771_v22  ;;  %v946_v25 = vrot.slane %v932_v23, %v398_v59  ;;  %v947_v26 = vcombine.high %v939_v24, %v939_v24  ;;  %953 = vst.msk [vmem:[%s1388_s14 + $0x3] sm:$0x1] %vm421_vm4, %v939_v24 }
 0x1e2   : > { %v948_v27 = vcombine.high %v946_v25, %v946_v25  ;;  %954 = vst.msk [vmem:[%s1388_s14 + $0x7] sm:$0x1] %vm421_vm4, %v946_v25  ;;  %955 = vst.msk [vmem:[%s1388_s14 + $0xb] sm:$0x1] %vm421_vm4, %v947_v26 }
 0x1e4   : > { %956 = vst.msk [vmem:[%s1388_s14 + $0xf] sm:$0x1] %vm421_vm4, %v948_v27 }
 0x1e5   : > { %1186 = shalt.err (!%p1183_p3)
}
 0x1e6   : > { %s1187_s7 = scalar_lea.hbm %s1421_s28, 256  ;;  %s1191_s10 = scalar_lea.hbm %s1478_s4, 512 }
 0x1e7   : > { %p1188_p4 = scmp.ne.s32.totalorder %s1421_s28, %s1187_s7  ;;  %p1192_p9 = scmp.lt.u32.totalorder %s1421_s28, %s1478_s4 }
 0x1e8   : > { %p1193_p10 = scmp.lt.u32.totalorder %s1191_s10, %s1187_s7  ;;  %p1195_p12 = scmp.lt.u32.totalorder %s1187_s7, %s1421_s28 }
 0x1e9   : > { %p1189_p7 = pnand %p1188_p4, %p1307_p5 }
 0x1ea   : > { %p1194_p11 = por %p1193_p10, %p1192_p9 }
 0x1eb   : > { %p1190_p8 = pneg %p1189_p7 }
 0x1ec   : > { %p1196_p13 = por %p1195_p12, %p1194_p11 }
 0x1ee   : > { %p1197_p0 = pnand %p1196_p13, %p1190_p8 }
 0x1f0   : > { %1200 = shalt.err (!%p1197_p0)
}
 0x1f1   : > { %s1242_s13 = smov 64   ;;  %s1243_s14 = smov 4  }
 0x1f2   : > { %1127 = dma.vmem_to_hbm [thread:$0]  (%p1307_p5), %s1423_s22, 256, %s1421_s28, %s1433_s19, %s1242_s13, %s1242_s13, %s1243_s14  }
 0x1f3 PF: > { %p1133_p1 = scmp.ge.s32.totalorder %s1235_s18, 2  ;;  %s986_s20 = sand.u32 1, %s1223_s15  }
 0x1f4   : > { %s987_s23 = scalar_lea.sflag [#allocation3], %s986_s20 }
 0x1f5   : > { %p1130_p2 = pnand %p1133_p1, %p1311_p6 }
 0x1f7   : > { %1218 = dma.done.wait (!%p1130_p2), %s987_s23, 256  }
 0x1f8   : > { %1220 = vsyncadd (!%p1130_p2), %s987_s23, 4294967040  ;;  %p14_p3 = scmp.ge.s32.totalorder %s1294_s21, 4   ;;  %s1481_s15 = smov %s1227_s16 }
 0x1f9   : > { %s1482_s16 = smov %s1231_s17  ;;  %s1483_s17 = smov %s1305_s24 }
 0x1fa   : > { %s1484_s18 = smov %s1294_s21  ;;  %16 = sbr.rel (!%p14_p3) target bundleno = 3 (0x3), region = 74 }
 0x201   :  { %992 = vsyncpa [#allocation3], 1 }
 0x202   :  { %994 = vsyncpa [#allocation3 + $0x1], 1 }

</bundles_post_ra>
